<compile_context>
chip_gen: v7x
topology: tpu7x:2x2x1
jax: 0.10.0
libtpu: 0.0.40
codegen_flags: <defaults>
</compile_context>

<pallas_src>
import jax
import jax.numpy as jnp
from jax.experimental import pallas as pl
from jax.experimental.pallas import tpu as pltpu

EPS = 1e-5


def _ru(x, m):
    return (x + m - 1) // m * m


def _const_spec(shape):
    """Grid-invariant input: single-buffered (double-buffering a constant block wastes VMEM)."""
    index_map = lambda *_: tuple(0 for _ in shape)
    try:
        return pl.BlockSpec(shape, index_map, pipeline_mode=pl.Buffered(1))
    except Exception:  # older jax without pipeline_mode support
        return pl.BlockSpec(shape, index_map)


def transition_forward(x_nchw, gamma, beta, w_oihw, *, max_row_tile=None, max_pix_tile=None):
    """Pallas implementation of Transition.forward. Input/output are NCHW like PyTorch."""
    N, C, H, W = x_nchw.shape
    Cout = w_oihw.shape[0]
    Ho, Wo = H // 2, W // 2
    H2, W2 = 2 * Ho, 2 * Wo                 # AvgPool2d(2) floors odd spatial dims
    R = N * Ho                              # pooled-row count (pass-1 leading axis)
    P = R * Wo                              # pooled output pixels
    n = float(N * H * W)                    # BN normalizes over the FULL (uncropped) input
    dtype = x_nchw.dtype
    isz = jnp.dtype(dtype).itemsize

    # ---------------- generation-aware VMEM budget ----------------
    try:
        vmem_cap = int(pltpu.get_tpu_info().vmem_capacity_bytes)
    except Exception:
        vmem_cap = 64 << 20                                   # conservative (v7x) default
    tile_budget = min((vmem_cap * 7) // 16, 56 << 20)         # ~28 MiB v7x, ~56 MiB v5e/v6e

    def _limit(est_bytes):
        return int(min(vmem_cap - (8 << 20), max(est_bytes + (16 << 20), 32 << 20)))

    # ---------------- layout: ONE NCHW->NHWC copy, then free reshape views ----------------
    x_even = x_nchw if (H2 == H and W2 == W) else x_nchw[:, :, :H2, :W2]
    x_nhwc = jnp.transpose(x_even, (0, 2, 3, 1))              # (N, H2, W2, C): single HBM copy
    x_view = x_nhwc.reshape(R, 2, Wo, 2 * C)                  # pure reshape, no data movement

    # ---------------- pass-1 tiling (VMEM-budgeted, biggest tile that fits) ----------------
    wo_sl = _ru(Wo, 8)
    x_row = 2 * wo_sl * _ru(2 * C, 128) * isz                 # VMEM bytes / leading row, x tile
    s_row = wo_sl * _ru(C, 128) * isz                         # VMEM bytes / leading row, s tile
    TR = max(1, min(R, 1024 if max_row_tile is None else max_row_tile))
    while TR > 1 and 2 * TR * (x_row + s_row) > tile_budget:
        TR = (TR + 1) // 2
    NB = pl.cdiv(R, TR)
    NC = 2 if NB >= 2 else 1          # megacore split of the stats pass (no harm on 1-TC chips)
    NB2 = pl.cdiv(NB, NC)

    def _blk(c, i):                   # clamp core 1's (possible) ragged tail to a valid block
        return jnp.minimum(c * NB2 + i, NB - 1)

    def pool_stats_kernel(x_ref, s_ref, stat_ref):
        # x_ref: (TR, 2, Wo, 2C)   s_ref: (TR, Wo, C)   stat_ref: (2, C) resident per core
        @pl.when(pl.program_id(1) == 0)
        def _():
            stat_ref[...] = jnp.zeros_like(stat_ref)

        x = x_ref[...].astype(jnp.float32)
        a, b = x[:, 0], x[:, 1]                               # the two H offsets
        x0, x1 = a[..., :C], a[..., C:]                       # the two W offsets (lane split)
        x2, x3 = b[..., :C], b[..., C:]
        s = x0 + x1 + x2 + x3                                 # raw 2x2 window sum (TR, Wo, C)
        sq = x0 * x0 + x1 * x1 + x2 * x2 + x3 * x3

        # mask rows past R (ragged last block / clamped duplicate block) for the statistics
        base = (pl.program_id(0) * NB2 + pl.program_id(1)) * TR
        rows = base + jax.lax.broadcasted_iota(jnp.int32, (TR, 1, 1), 0)
        valid = rows < R
        ssum = jnp.sum(jnp.sum(jnp.where(valid, s, 0.0), axis=0), axis=0, keepdims=True)
        qsum = jnp.sum(jnp.sum(jnp.where(valid, sq, 0.0), axis=0), axis=0, keepdims=True)
        stat_ref[0:1, :] += ssum
        stat_ref[1:2, :] += qsum

        s_ref[...] = s.astype(s_ref.dtype)

    est1 = 2 * TR * (x_row + s_row) + 4 * 8 * _ru(C, 128) * 4
    s_pooled, stats = pl.pallas_call(
        pool_stats_kernel,
        out_shape=(jax.ShapeDtypeStruct((R, Wo, C), dtype),
                   jax.ShapeDtypeStruct((NC, 2, C), jnp.float32)),
        grid=(NC, NB2),
        in_specs=[pl.BlockSpec((TR, 2, Wo, 2 * C), lambda c, i: (_blk(c, i), 0, 0, 0))],
        out_specs=(pl.BlockSpec((TR, Wo, C), lambda c, i: (_blk(c, i), 0, 0)),
                   pl.BlockSpec((None, 2, C), lambda c, i: (c, 0, 0))),
        compiler_params=pltpu.CompilerParams(
            dimension_semantics=("parallel", "arbitrary"),
            vmem_limit_bytes=_limit(est1)),
    )(x_view)

    # ---------------- BN statistics (wrapper side, tiny) ----------------
    csum = jnp.sum(stats[:, 0, :], axis=0)
    csumsq = jnp.sum(stats[:, 1, :], axis=0)
    # PyTorch BN sees the full (possibly odd) spatial extent; add the cropped border strips.
    if H2 != H:
        strip = x_nchw[:, :, H2:, :].astype(jnp.float32)
        csum = csum + jnp.sum(strip, axis=(0, 2, 3))
        csumsq = csumsq + jnp.sum(strip * strip, axis=(0, 2, 3))
    if W2 != W:
        strip = x_nchw[:, :, :H2, W2:].astype(jnp.float32)
        csum = csum + jnp.sum(strip, axis=(0, 2, 3))
        csumsq = csumsq + jnp.sum(strip * strip, axis=(0, 2, 3))

    mean = csum / n
    # TODO(synk): E[x^2]-E[x]^2 in f32 can lose precision when |mean| >> std; a shifted two-pass
    #             variance would cost one extra read of x, so we keep the one-pass form.
    var = jnp.maximum(csumsq / n - mean * mean, 0.0)          # biased variance (train-mode BN)
    inv = jax.lax.rsqrt(var + EPS)
    scale = inv * gamma.astype(jnp.float32)                   # (C,)

    # Fold BN affine + 0.25 pool scale into the 1x1-conv weight and a bias row (tiny, one-time).
    w = jnp.transpose(w_oihw.reshape(Cout, C).astype(jnp.float32))       # (C, Cout)
    w_fold = ((0.25 * scale)[:, None] * w).astype(dtype)                 # bf16 MXU path if bf16 in
    bias = ((beta.astype(jnp.float32) - mean * scale) @ w)[None, :]      # (1, Cout), f32

    # ---------------- pass 2: pooled sums @ folded weight + bias ----------------
    s2 = s_pooled.reshape(P, C)                               # free reshape
    s_row2 = _ru(C, 128) * isz
    o_row2 = _ru(Cout, 128) * isz
    w_bytes = _ru(C, 8) * _ru(Cout, 128) * isz
    if P <= 8:
        TP = P
    else:
        TP = min(P, 4096 if max_pix_tile is None else max_pix_tile)
        TP = max(8, (TP // 8) * 8)
        while TP > 8 and 2 * TP * (s_row2 + o_row2) + 2 * w_bytes > tile_budget:
            TP = max(8, ((TP // 2) // 8) * 8)

    def apply_kernel(s_ref, w_ref, b_ref, o_ref):
        acc = jnp.dot(s_ref[...], w_ref[...], preferred_element_type=jnp.float32)
        o_ref[...] = (acc + b_ref[...]).astype(o_ref.dtype)

    est2 = 2 * TP * (s_row2 + o_row2) + 2 * w_bytes + 2 * 8 * _ru(Cout, 128) * 4
    out = pl.pallas_call(
        apply_kernel,
        out_shape=jax.ShapeDtypeStruct((P, Cout), dtype),
        grid=(pl.cdiv(P, TP),),
        in_specs=[pl.BlockSpec((TP, C), lambda i: (i, 0)),
                  _const_spec((C, Cout)),
                  _const_spec((1, Cout))],
        out_specs=pl.BlockSpec((TP, Cout), lambda i: (i, 0)),
        compiler_params=pltpu.CompilerParams(
            dimension_semantics=("parallel",),
            vmem_limit_bytes=_limit(est2)),
    )(s2, w_fold, bias)

    out = out.reshape(N, Ho, Wo, Cout)
    # TODO(synk): returning NHWC would avoid this final transpose; NCHW kept for PyTorch parity.
    return jnp.transpose(out, (0, 3, 1, 2))                   # (N, Cout, Ho, Wo)


def transition_reference(x, gamma, beta, w_oihw):
    """Pure-JAX reference mirroring the PyTorch forward (train-mode BN, floor pooling)."""
    mean = jnp.mean(x, axis=(0, 2, 3), keepdims=True)
    var = jnp.mean((x - mean) ** 2, axis=(0, 2, 3), keepdims=True)
    y = (x - mean) * jax.lax.rsqrt(var + EPS)
    y = y * gamma.reshape(1, -1, 1, 1) + beta.reshape(1, -1, 1, 1)
    z = jnp.einsum("nchw,oc->nohw", y, w_oihw.reshape(w_oihw.shape[0], -1))
    Nn, Co, Hh, Ww = z.shape
    Hq, Wq = (Hh // 2) * 2, (Ww // 2) * 2
    z = z[:, :, :Hq, :Wq]
    return z.reshape(Nn, Co, Hq // 2, 2, Wq // 2, 2).mean(axis=(3, 5))


if __name__ == "__main__":
    # Shapes consistent with Transition(num_channels=4, compression=0.5): Cout = floor(0.5*4) = 2
    N, C, H, W = 2, 4, 16, 16
    Cout = 2

    key = jax.random.PRNGKey(0)
    kx, kg, kb, kw = jax.random.split(key, 4)
    x = jax.random.normal(kx, (N, C, H, W), dtype=jnp.float32)
    gamma = 1.0 + 0.1 * jax.random.normal(kg, (C,), dtype=jnp.float32)        # BN weight
    beta = 0.1 * jax.random.normal(kb, (C,), dtype=jnp.float32)               # BN bias
    w_oihw = jax.random.normal(kw, (Cout, C, 1, 1), dtype=jnp.float32) * 0.5  # conv weight (no bias)

    fwd = jax.jit(transition_forward, static_argnames=("max_row_tile", "max_pix_tile"))
    out = jax.block_until_ready(fwd(x, gamma, beta, w_oihw))
    ref = jax.block_until_ready(transition_reference(x, gamma, beta, w_oihw))
    assert out.shape == (N, Cout, H // 2, W // 2), out.shape
    assert jnp.allclose(out, ref, atol=1e-4, rtol=1e-4), float(jnp.max(jnp.abs(out - ref)))

    # Exercise the general paths: odd spatial dims (pool floors, border stats), ragged/multi-block
    # grids with row masking, the 2-way core split of pass 1 and its clamped duplicate tail block.
    x2 = jax.random.normal(kx, (N, C, 15, 17), dtype=jnp.float32)
    out2 = jax.block_until_ready(
        transition_forward(x2, gamma, beta, w_oihw, max_row_tile=3, max_pix_tile=24))
    ref2 = jax.block_until_ready(transition_reference(x2, gamma, beta, w_oihw))
    assert out2.shape == (N, Cout, 7, 8), out2.shape
    assert jnp.allclose(out2, ref2, atol=1e-4, rtol=1e-4), float(jnp.max(jnp.abs(out2 - ref2)))

    print("KERNEL_OK")
</pallas_src>

<mosaic_0001>
module attributes {stable_mosaic.version = 11 : i64} {
  func.func @pool_stats_kernel(%arg0: i32, %arg1: i32, %arg2: memref<16x2x8x8xf32, #tpu.memory_space<vmem>>, %arg3: memref<16x8x4xf32, #tpu.memory_space<vmem>>, %arg4: memref<1x2x4xf32, #tpu.memory_space<vmem>>) attributes {dimension_semantics = [#tpu.dimension_semantics<parallel>, #tpu.dimension_semantics<arbitrary>], iteration_bounds = array<i64: 1, 1>, scalar_prefetch = 0 : i64, scratch_operands = 0 : i64, tpu.core_type = #tpu.core_type<tc>, window_params = [{transform_indices = @transform_0, window_bounds = array<i64: 16, 2, 8, 8>}, {transform_indices = @transform_1, window_bounds = array<i64: 16, 8, 4>}, {transform_indices = @transform_2, window_bounds = array<i64: 1, 2, 4>}]} {
    %c0_i32 = arith.constant 0 : i32
    %0 = arith.cmpi eq, %arg1, %c0_i32 : i32
    %1 = arith.extui %0 : i1 to i32
    %c0_i32_0 = arith.constant 0 : i32
    %2 = arith.cmpi ne, %1, %c0_i32_0 : i32
    scf.if %2 {
      %cst_24 = arith.constant 0.000000e+00 : f32
      %57 = vector.broadcast %cst_24 : f32 to vector<2x4xf32>
      %c0_25 = arith.constant 0 : index
      %c0_26 = arith.constant 0 : index
      %c0_27 = arith.constant 0 : index
      %58 = vector.load %arg4[%c0_25, %c0_26, %c0_27] : memref<1x2x4xf32, #tpu.memory_space<vmem>>, vector<1x2x4xf32>
      %59 = vector.shape_cast %58 : vector<1x2x4xf32> to vector<2x4xf32>
      %60 = vector.shape_cast %57 : vector<2x4xf32> to vector<1x2x4xf32>
      tpu.vector_store %arg4[%c0_25, %c0_26, %c0_27], %60 {strides = array<i32>} : memref<1x2x4xf32, #tpu.memory_space<vmem>>, vector<1x2x4xf32>,
    } else {
    }
    %c0 = arith.constant 0 : index
    %c0_1 = arith.constant 0 : index
    %c0_2 = arith.constant 0 : index
    %c0_3 = arith.constant 0 : index
    %3 = vector.load %arg2[%c0, %c0_1, %c0_2, %c0_3] : memref<16x2x8x8xf32, #tpu.memory_space<vmem>>, vector<16x2x8x8xf32>
    %4 = vector.extract_strided_slice %3 {offsets = [0, 0, 0, 0], sizes = [16, 1, 8, 8], strides = [1, 1, 1, 1]} : vector<16x2x8x8xf32> to vector<16x1x8x8xf32>
    %5 = vector.shape_cast %4 : vector<16x1x8x8xf32> to vector<16x8x8xf32>
    %6 = vector.extract_strided_slice %3 {offsets = [0, 1, 0, 0], sizes = [16, 1, 8, 8], strides = [1, 1, 1, 1]} : vector<16x2x8x8xf32> to vector<16x1x8x8xf32>
    %7 = vector.shape_cast %6 : vector<16x1x8x8xf32> to vector<16x8x8xf32>
    %8 = vector.extract_strided_slice %5 {offsets = [0, 0, 0], sizes = [16, 8, 4], strides = [1, 1, 1]} : vector<16x8x8xf32> to vector<16x8x4xf32>
    %9 = vector.extract_strided_slice %5 {offsets = [0, 0, 4], sizes = [16, 8, 4], strides = [1, 1, 1]} : vector<16x8x8xf32> to vector<16x8x4xf32>
    %10 = vector.extract_strided_slice %7 {offsets = [0, 0, 0], sizes = [16, 8, 4], strides = [1, 1, 1]} : vector<16x8x8xf32> to vector<16x8x4xf32>
    %11 = vector.extract_strided_slice %7 {offsets = [0, 0, 4], sizes = [16, 8, 4], strides = [1, 1, 1]} : vector<16x8x8xf32> to vector<16x8x4xf32>
    %12 = arith.addf %8, %9 : vector<16x8x4xf32>
    %13 = arith.addf %12, %10 : vector<16x8x4xf32>
    %14 = arith.addf %13, %11 : vector<16x8x4xf32>
    %15 = arith.mulf %8, %8 : vector<16x8x4xf32>
    %16 = arith.mulf %9, %9 : vector<16x8x4xf32>
    %17 = arith.addf %15, %16 : vector<16x8x4xf32>
    %18 = arith.mulf %10, %10 : vector<16x8x4xf32>
    %19 = arith.addf %17, %18 : vector<16x8x4xf32>
    %20 = arith.mulf %11, %11 : vector<16x8x4xf32>
    %21 = arith.addf %19, %20 : vector<16x8x4xf32>
    %c1_i32 = arith.constant 1 : i32
    %22 = arith.muli %arg0, %c1_i32 : i32
    %23 = arith.addi %22, %arg1 : i32
    %c16_i32 = arith.constant 16 : i32
    %24 = arith.muli %23, %c16_i32 : i32
    %25 = tpu.iota {dimensions = array<i32: 0>} : vector<16x1x1xi32>
    %26 = vector.broadcast %24 : i32 to vector<16x1x1xi32>
    %27 = arith.addi %26, %25 : vector<16x1x1xi32>
    %c16_i32_4 = arith.constant 16 : i32
    %28 = vector.broadcast %c16_i32_4 : i32 to vector<16x1x1xi32>
    %29 = arith.cmpi slt, %27, %28 : vector<16x1x1xi32>
    %cst = arith.constant 0.000000e+00 : f32
    %30 = vector.shape_cast %29 : vector<16x1x1xi1> to vector<16x1x1xi1>
    %31 = vector.broadcast %30 : vector<16x1x1xi1> to vector<16x8x4xi1>
    %32 = vector.broadcast %cst : f32 to vector<16x8x4xf32>
    %33 = arith.select %31, %14, %32 : vector<16x8x4xi1>, vector<16x8x4xf32>
    %cst_5 = arith.constant dense<0.000000e+00> : vector<8x4xf32>
    %34 = vector.multi_reduction <add>, %33, %cst_5 [0] : vector<16x8x4xf32> to vector<8x4xf32>
    %cst_6 = arith.constant dense<0.000000e+00> : vector<4xf32>
    %35 = vector.multi_reduction <add>, %34, %cst_6 [0] : vector<8x4xf32> to vector<4xf32>
    %36 = vector.shape_cast %35 : vector<4xf32> to vector<1x4xf32>
    %cst_7 = arith.constant 0.000000e+00 : f32
    %37 = vector.shape_cast %29 : vector<16x1x1xi1> to vector<16x1x1xi1>
    %38 = vector.broadcast %37 : vector<16x1x1xi1> to vector<16x8x4xi1>
    %39 = vector.broadcast %cst_7 : f32 to vector<16x8x4xf32>
    %40 = arith.select %38, %21, %39 : vector<16x8x4xi1>, vector<16x8x4xf32>
    %cst_8 = arith.constant dense<0.000000e+00> : vector<8x4xf32>
    %41 = vector.multi_reduction <add>, %40, %cst_8 [0] : vector<16x8x4xf32> to vector<8x4xf32>
    %cst_9 = arith.constant dense<0.000000e+00> : vector<4xf32>
    %42 = vector.multi_reduction <add>, %41, %cst_9 [0] : vector<8x4xf32> to vector<4xf32>
    %43 = vector.shape_cast %42 : vector<4xf32> to vector<1x4xf32>
    %c0_10 = arith.constant 0 : index
    %c0_11 = arith.constant 0 : index
    %c0_12 = arith.constant 0 : index
    %44 = vector.load %arg4[%c0_10, %c0_11, %c0_12] : memref<1x2x4xf32, #tpu.memory_space<vmem>>, vector<1x1x4xf32>
    %45 = vector.shape_cast %44 : vector<1x1x4xf32> to vector<1x4xf32>
    %46 = arith.addf %45, %36 : vector<1x4xf32>
    %c0_13 = arith.constant 0 : index
    %c0_14 = arith.constant 0 : index
    %c0_15 = arith.constant 0 : index
    %47 = vector.load %arg4[%c0_13, %c0_14, %c0_15] : memref<1x2x4xf32, #tpu.memory_space<vmem>>, vector<1x1x4xf32>
    %48 = vector.shape_cast %47 : vector<1x1x4xf32> to vector<1x4xf32>
    %49 = vector.shape_cast %46 : vector<1x4xf32> to vector<1x1x4xf32>
    tpu.vector_store %arg4[%c0_13, %c0_14, %c0_15], %49 {strides = array<i32>} : memref<1x2x4xf32, #tpu.memory_space<vmem>>, vector<1x1x4xf32>,
    %c0_16 = arith.constant 0 : index
    %c1 = arith.constant 1 : index
    %c0_17 = arith.constant 0 : index
    %50 = vector.load %arg4[%c0_16, %c1, %c0_17] : memref<1x2x4xf32, #tpu.memory_space<vmem>>, vector<1x1x4xf32>
    %51 = vector.shape_cast %50 : vector<1x1x4xf32> to vector<1x4xf32>
    %52 = arith.addf %51, %43 : vector<1x4xf32>
    %c0_18 = arith.constant 0 : index
    %c1_19 = arith.constant 1 : index
    %c0_20 = arith.constant 0 : index
    %53 = vector.load %arg4[%c0_18, %c1_19, %c0_20] : memref<1x2x4xf32, #tpu.memory_space<vmem>>, vector<1x1x4xf32>
    %54 = vector.shape_cast %53 : vector<1x1x4xf32> to vector<1x4xf32>
    %55 = vector.shape_cast %52 : vector<1x4xf32> to vector<1x1x4xf32>
    tpu.vector_store %arg4[%c0_18, %c1_19, %c0_20], %55 {strides = array<i32>} : memref<1x2x4xf32, #tpu.memory_space<vmem>>, vector<1x1x4xf32>,
    %c0_21 = arith.constant 0 : index
    %c0_22 = arith.constant 0 : index
    %c0_23 = arith.constant 0 : index
    %56 = vector.load %arg3[%c0_21, %c0_22, %c0_23] : memref<16x8x4xf32, #tpu.memory_space<vmem>>, vector<16x8x4xf32>
    tpu.vector_store %arg3[%c0_21, %c0_22, %c0_23], %14 {strides = array<i32>} : memref<16x8x4xf32, #tpu.memory_space<vmem>>, vector<16x8x4xf32>,
    return
  }
  func.func @transform_0(%arg0: i32, %arg1: i32) -> (i32, i32, i32, i32) {
    %c1_i32 = arith.constant 1 : i32
    %0 = arith.muli %arg0, %c1_i32 : i32
    %1 = arith.addi %0, %arg1 : i32
    %c0_i32 = arith.constant 0 : i32
    %2 = arith.minsi %1, %c0_i32 : i32
    %c0_i32_0 = arith.constant 0 : i32
    %c0_i32_1 = arith.constant 0 : i32
    %c0_i32_2 = arith.constant 0 : i32
    %c0_i32_3 = arith.constant 0 : i32
    return %2, %c0_i32_0, %c0_i32_1, %c0_i32_2 : i32, i32, i32, i32
  }
  func.func @transform_1(%arg0: i32, %arg1: i32) -> (i32, i32, i32) {
    %c1_i32 = arith.constant 1 : i32
    %0 = arith.muli %arg0, %c1_i32 : i32
    %1 = arith.addi %0, %arg1 : i32
    %c0_i32 = arith.constant 0 : i32
    %2 = arith.minsi %1, %c0_i32 : i32
    %c0_i32_0 = arith.constant 0 : i32
    %c0_i32_1 = arith.constant 0 : i32
    %c0_i32_2 = arith.constant 0 : i32
    return %2, %c0_i32_0, %c0_i32_1 : i32, i32, i32
  }
  func.func @transform_2(%arg0: i32, %arg1: i32) -> (i32, i32, i32) {
    %c0_i32 = arith.constant 0 : i32
    %c0_i32_0 = arith.constant 0 : i32
    %c0_i32_1 = arith.constant 0 : i32
    return %arg0, %c0_i32, %c0_i32_0 : i32, i32, i32
  }
}

module attributes {stable_mosaic.version = 11 : i64} {
  func.func @apply_kernel(%arg0: i32, %arg1: memref<128x4xf32, #tpu.memory_space<vmem>>, %arg2: memref<4x2xf32, #tpu.memory_space<vmem>>, %arg3: memref<1x2xf32, #tpu.memory_space<vmem>>, %arg4: memref<128x2xf32, #tpu.memory_space<vmem>>) attributes {dimension_semantics = [#tpu.dimension_semantics<parallel>], iteration_bounds = array<i64: 1>, scalar_prefetch = 0 : i64, scratch_operands = 0 : i64, tpu.core_type = #tpu.core_type<tc>, window_params = [{transform_indices = @transform_0, window_bounds = array<i64: 128, 4>}, {pipeline_mode = #tpu.pipeline_mode<synchronous>, transform_indices = @transform_1, window_bounds = array<i64: 4, 2>}, {pipeline_mode = #tpu.pipeline_mode<synchronous>, transform_indices = @transform_2, window_bounds = array<i64: 1, 2>}, {transform_indices = @transform_3, window_bounds = array<i64: 128, 2>}]} {
    %c0 = arith.constant 0 : index
    %c0_0 = arith.constant 0 : index
    %0 = vector.load %arg1[%c0, %c0_0] : memref<128x4xf32, #tpu.memory_space<vmem>>, vector<128x4xf32>
    %c0_1 = arith.constant 0 : index
    %c0_2 = arith.constant 0 : index
    %1 = vector.load %arg2[%c0_1, %c0_2] : memref<4x2xf32, #tpu.memory_space<vmem>>, vector<4x2xf32>
    %cst = arith.constant dense<0.000000e+00> : vector<128x2xf32>
    %2 = tpu.matmul %0, %1, %cst {dimension_numbers = #tpu.dot_dimension_numbers<[1], [0], [0], [1], [0, 0, 1, 1], [], []>} : vector<128x4xf32>, vector<4x2xf32>, vector<128x2xf32> -> vector<128x2xf32>
    %c0_3 = arith.constant 0 : index
    %c0_4 = arith.constant 0 : index
    %3 = vector.load %arg3[%c0_3, %c0_4] : memref<1x2xf32, #tpu.memory_space<vmem>>, vector<1x2xf32>
    %4 = vector.broadcast %3 : vector<1x2xf32> to vector<128x2xf32>
    %5 = arith.addf %2, %4 : vector<128x2xf32>
    %c0_5 = arith.constant 0 : index
    %c0_6 = arith.constant 0 : index
    %6 = vector.load %arg4[%c0_5, %c0_6] : memref<128x2xf32, #tpu.memory_space<vmem>>, vector<128x2xf32>
    tpu.vector_store %arg4[%c0_5, %c0_6], %5 {strides = array<i32>} : memref<128x2xf32, #tpu.memory_space<vmem>>, vector<128x2xf32>,
    return
  }
  func.func @transform_0(%arg0: i32) -> (i32, i32) {
    %c0_i32 = arith.constant 0 : i32
    %c0_i32_0 = arith.constant 0 : i32
    return %arg0, %c0_i32 : i32, i32
  }
  func.func @transform_1(%arg0: i32) -> (i32, i32) {
    %c0_i32 = arith.constant 0 : i32
    %c0_i32_0 = arith.constant 0 : i32
    %c0_i32_1 = arith.constant 0 : i32
    return %c0_i32, %c0_i32_0 : i32, i32
  }
  func.func @transform_2(%arg0: i32) -> (i32, i32) {
    %c0_i32 = arith.constant 0 : i32
    %c0_i32_0 = arith.constant 0 : i32
    %c0_i32_1 = arith.constant 0 : i32
    return %c0_i32, %c0_i32_0 : i32, i32
  }
  func.func @transform_3(%arg0: i32) -> (i32, i32) {
    %c0_i32 = arith.constant 0 : i32
    %c0_i32_0 = arith.constant 0 : i32
    return %arg0, %c0_i32 : i32, i32
  }
}

</mosaic_0001>

<bundles_post_ra>
// kernel: transition_forward.3
= control target key start
LH: loop header
LB: loop body
LE: loop exit
PB: predicated region body
PF: predicated region fallthrough
CT: control target
= control target key end

     0   :  { %vm87_vm0 = vcmask 1043456   ;;  %vm38_vm1 = vcmask 31744   ;;  %vm236_vm2 = vcmask 15360   ;;  %s474_s1 = inlined_call_operand.vmem [shape: f32[4,2], index: 1, kind: input, shape index: {}]   ;;  %s475_s0 = inlined_call_operand.vmem [shape: f32[128,4], index: 0, kind: input, shape index: {}]   ;;  %s476_s2 = inlined_call_operand.vmem [shape: f32[1,2], index: 2, kind: input, shape index: {}]   ;;  %s477_s3 = inlined_call_operand.vmem [shape: f32[128,2], index: 3, kind: output, shape index: {}]  }
   0x1   :  { %v30_v0 = vld [vmem:[%s474_s1] sm:$0xf]  ;;  %v15_v3 = vld [vmem:[%s475_s0 + $0x8] sm:$0xff]  ;;  %v16_v5 = vld [vmem:[%s475_s0 + $0x10] sm:$0xff] }
   0x2   :  { %v14_v1 = vld [vmem:[%s475_s0] sm:$0xff]  ;;  %292 = vmatprep.subr.msk.mxu0 %vm87_vm0, %v30_v0  ;;  %318 = vmatprep.subr.msk.mxu1 %vm87_vm0, %v30_v0  ;;  %v23_v4 = vld [vmem:[%s475_s0 + $0x48] sm:$0xff]  ;;  %v24_v6 = vld [vmem:[%s475_s0 + $0x50] sm:$0xff] }
   0x3   :  { %v22_v2 = vld [vmem:[%s475_s0 + $0x40] sm:$0xff]  ;;  %293 = vmatpush3.msk.msra.mxu0 %vm87_vm0, %v30_v0  ;;  %319 = vmatpush3.msk.msra.mxu1 %vm87_vm0, %v30_v0  ;;  %v17_v7 = vld [vmem:[%s475_s0 + $0x18] sm:$0xff]  ;;  %v19_v11 = vld [vmem:[%s475_s0 + $0x28] sm:$0xff] }
   0x4   :  { %294 = vmatprep.mubr.msk.f32.mxu0 %vm38_vm1, %v14_v1  ;;  %306 = vmatprep.mubr.msk.f32.mxu1 %vm38_vm1, %v22_v2  ;;  %v25_v8 = vld [vmem:[%s475_s0 + $0x58] sm:$0xff]  ;;  %v18_v9 = vld [vmem:[%s475_s0 + $0x20] sm:$0xff]  ;;  %v27_v12 = vld [vmem:[%s475_s0 + $0x68] sm:$0xff] }
   0x5   :  { %295 = vmatmul.mubr.msk.f32.vlgmr.msra.gmra.mrb[0].mxu0 %vm38_vm1, %v15_v3  ;;  %307 = vmatmul.mubr.msk.f32.vlgmr.msra.gmra.mrb[0].mxu1 %vm38_vm1, %v23_v4  ;;  %v26_v10 = vld [vmem:[%s475_s0 + $0x60] sm:$0xff]  ;;  %v20_v13 = vld [vmem:[%s475_s0 + $0x30] sm:$0xff]  ;;  %v21_v15 = vld [vmem:[%s475_s0 + $0x38] sm:$0xff] }
   0x6   :  { %297 = vmatprep.mubr.msk.f32.mxu0 %vm38_vm1, %v16_v5  ;;  %309 = vmatprep.mubr.msk.f32.mxu1 %vm38_vm1, %v24_v6  ;;  %v28_v14 = vld [vmem:[%s475_s0 + $0x70] sm:$0xff]  ;;  %v29_v16 = vld [vmem:[%s475_s0 + $0x78] sm:$0xff]  ;;  %v257_v17 = vld [vmem:[%s476_s2] ss:$0 sm:$0xff] }
   0x9   :  { %298 = vmatmul.mubr.msk.f32.gmra.mrb[2].mxu0 %vm38_vm1, %v17_v7  ;;  %310 = vmatmul.mubr.msk.f32.gmra.mrb[2].mxu1 %vm38_vm1, %v25_v8 }
   0xa   :  { %300 = vmatprep.mubr.msk.f32.mxu0 %vm38_vm1, %v18_v9  ;;  %312 = vmatprep.mubr.msk.f32.mxu1 %vm38_vm1, %v26_v10 }
   0xd   :  { %301 = vmatmul.mubr.msk.f32.gmra.mrb[4].mxu0 %vm38_vm1, %v19_v11  ;;  %313 = vmatmul.mubr.msk.f32.gmra.mrb[4].mxu1 %vm38_vm1, %v27_v12 }
   0xe   :  { %303 = vmatprep.mubr.msk.f32.mxu0 %vm38_vm1, %v20_v13  ;;  %315 = vmatprep.mubr.msk.f32.mxu1 %vm38_vm1, %v28_v14 }
  0x11   :  { %304 = vmatmul.mubr.msk.f32.gmra.mrb[6].mxu0 %vm38_vm1, %v21_v15  ;;  %316 = vmatmul.mubr.msk.f32.gmra.mrb[6].mxu1 %vm38_vm1, %v29_v16 }
  0xd8   :  { %v296_v18 = vpop.f32.mrb[0].mxu0  ;;  %v308_v19 = vpop.f32.mrb[0].mxu1 }
  0xd9   :  { %v163_v20 = vadd.f32 %v296_v18, %v257_v17  ;;  %v203_v21 = vadd.f32 %v308_v19, %v257_v17  ;;  %v157_v22 = vpop.f32.mrb[1].mxu0  ;;  %v197_v23 = vpop.f32.mrb[1].mxu1 }
  0xda   :  { %v158_v24 = vadd.f32 %v257_v17, %v157_v22  ;;  %v198_v25 = vadd.f32 %v257_v17, %v197_v23 }
  0xdb   :  { %238 = vst.msk [vmem:[%s477_s3 + $0x8] sm:$0xff] %vm236_vm2, %v163_v20  ;;  %246 = vst.msk [vmem:[%s477_s3 + $0x48] sm:$0xff] %vm236_vm2, %v203_v21 }
  0xdc   :  { %237 = vst.msk [vmem:[%s477_s3] sm:$0xff] %vm236_vm2, %v158_v24  ;;  %245 = vst.msk [vmem:[%s477_s3 + $0x40] sm:$0xff] %vm236_vm2, %v198_v25  ;;  %v299_v26 = vpop.f32.mrb[2].mxu0  ;;  %v311_v27 = vpop.f32.mrb[2].mxu1 }
  0xdd   :  { %v173_v28 = vadd.f32 %v299_v26, %v257_v17  ;;  %v213_v29 = vadd.f32 %v311_v27, %v257_v17  ;;  %v167_v30 = vpop.f32.mrb[3].mxu0  ;;  %v207_v31 = vpop.f32.mrb[3].mxu1 }
  0xde   :  { %v168_v32 = vadd.f32 %v257_v17, %v167_v30  ;;  %v208_v33 = vadd.f32 %v257_v17, %v207_v31 }
  0xdf   :  { %240 = vst.msk [vmem:[%s477_s3 + $0x18] sm:$0xff] %vm236_vm2, %v173_v28  ;;  %248 = vst.msk [vmem:[%s477_s3 + $0x58] sm:$0xff] %vm236_vm2, %v213_v29 }
  0xe0   :  { %239 = vst.msk [vmem:[%s477_s3 + $0x10] sm:$0xff] %vm236_vm2, %v168_v32  ;;  %247 = vst.msk [vmem:[%s477_s3 + $0x50] sm:$0xff] %vm236_vm2, %v208_v33  ;;  %v302_v34 = vpop.f32.mrb[4].mxu0  ;;  %v314_v35 = vpop.f32.mrb[4].mxu1 }
  0xe1   :  { %v183_v36 = vadd.f32 %v302_v34, %v257_v17  ;;  %v223_v37 = vadd.f32 %v314_v35, %v257_v17  ;;  %v177_v38 = vpop.f32.mrb[5].mxu0  ;;  %v217_v39 = vpop.f32.mrb[5].mxu1 }
  0xe2   :  { %v178_v40 = vadd.f32 %v257_v17, %v177_v38  ;;  %v218_v41 = vadd.f32 %v257_v17, %v217_v39 }
  0xe3   :  { %242 = vst.msk [vmem:[%s477_s3 + $0x28] sm:$0xff] %vm236_vm2, %v183_v36  ;;  %250 = vst.msk [vmem:[%s477_s3 + $0x68] sm:$0xff] %vm236_vm2, %v223_v37 }
  0xe4   :  { %241 = vst.msk [vmem:[%s477_s3 + $0x20] sm:$0xff] %vm236_vm2, %v178_v40  ;;  %249 = vst.msk [vmem:[%s477_s3 + $0x60] sm:$0xff] %vm236_vm2, %v218_v41  ;;  %v305_v42 = vpop.f32.mrb[6].mxu0  ;;  %v317_v43 = vpop.f32.mrb[6].mxu1 }
  0xe5   :  { %v193_v44 = vadd.f32 %v305_v42, %v257_v17  ;;  %v233_v45 = vadd.f32 %v317_v43, %v257_v17  ;;  %v187_v46 = vpop.f32.mrb[7].mxu0  ;;  %v227_v47 = vpop.f32.mrb[7].mxu1 }
  0xe6   :  { %v188_v48 = vadd.f32 %v257_v17, %v187_v46  ;;  %v228_v49 = vadd.f32 %v257_v17, %v227_v47 }
  0xe7   :  { %244 = vst.msk [vmem:[%s477_s3 + $0x38] sm:$0xff] %vm236_vm2, %v193_v44  ;;  %252 = vst.msk [vmem:[%s477_s3 + $0x78] sm:$0xff] %vm236_vm2, %v233_v45 }
  0xe8   :  { %243 = vst.msk [vmem:[%s477_s3 + $0x30] sm:$0xff] %vm236_vm2, %v188_v48  ;;  %251 = vst.msk [vmem:[%s477_s3 + $0x70] sm:$0xff] %vm236_vm2, %v228_v49 }

// kernel: transition_forward.2
= control target key start
LH: loop header
LB: loop body
LE: loop exit
PB: predicated region body
PF: predicated region fallthrough
CT: control target
= control target key end

     0   :  { %s729_s13 = smov 124   ;;  %vm69_vm0 = vcmask 25600   ;;  %v730_v58 = vmov 0.0   ;;  %vm569_vm1 = vcmask 31744   ;;  %vm664_vm2 = vcmask 24576   ;;  %s1396_s0 = inlined_call_operand.vmem [shape: f32[16,2,8,8], index: 0, kind: input, shape index: {}]   ;;  %s1397_s2 = inlined_call_operand.vmem [shape: f32[1,2,4], index: 2, kind: output, shape index: {1}]   ;;  %s1398_s1 = inlined_call_operand.vmem [shape: f32[16,8,4], index: 1, kind: output, shape index: {0}]  }
   0x1   :  { %v749_v0 = vld [vmem:[%s1396_s0 + $0x20] sm:$0xff]  ;;  %v763_v2 = vld [vmem:[%s1396_s0 + $0x30] sm:$0xff]  ;;  %v830_v12 = vld [vmem:[%s1396_s0 + $0x8] sm:$0xff]  ;;  %70 = vst.msk [vmem:[%s1397_s2] sm:$0x3] %vm69_vm0, %v730_v58 }
   0x2   :  { %v754_v1 = vld [vmem:[%s1396_s0] sm:$0xff]  ;;  %123 = vrot.lane.b32.xlu1 %v749_v0, %s729_s13  ;;  %v768_v3 = vld [vmem:[%s1396_s0 + $0x10] sm:$0xff]  ;;  %v821_v11 = vmul.f32 %v749_v0, %v749_v0  ;;  %v835_v13 = vld [vmem:[%s1396_s0 + $0x18] sm:$0xff]  ;;  %v843_v14 = vmul.f32 %v763_v2, %v763_v2  ;;  %v847_v15 = vmul.f32 %v830_v12, %v830_v12 }
   0x3   :  { %119 = vrot.lane.b32.xlu0 %v754_v1, %s729_s13  ;;  %v777_v4 = vld [vmem:[%s1396_s0 + $0x50] sm:$0xff]  ;;  %v782_v5 = vld [vmem:[%s1396_s0 + $0x40] sm:$0xff]  ;;  %v804_v8 = vmul.f32 %v754_v1, %v754_v1  ;;  %v817_v10 = vmul.f32 %v768_v3, %v768_v3  ;;  %v855_v16 = vmul.f32 %v835_v13, %v835_v13  ;;  %v860_v17 = vld [vmem:[%s1396_s0 + $0x28] sm:$0xff] }
   0x4   :  { %v791_v6 = vld [vmem:[%s1396_s0 + $0x70] sm:$0xff]  ;;  %v796_v7 = vld [vmem:[%s1396_s0 + $0x60] sm:$0xff]  ;;  %v868_v18 = vmul.f32 %v782_v5, %v782_v5  ;;  %v872_v19 = vmul.f32 %v860_v17, %v860_v17  ;;  %v880_v20 = vmul.f32 %v777_v4, %v777_v4  ;;  %v885_v21 = vld [vmem:[%s1396_s0 + $0x38] sm:$0xff] }
   0x5   :  { %v809_v9 = vld [vmem:[%s1396_s0 + $0x80] sm:$0xff]  ;;  %v893_v22 = vmul.f32 %v885_v21, %v885_v21  ;;  %v898_v23 = vld [vmem:[%s1396_s0 + $0x48] sm:$0xff]  ;;  %v906_v24 = vmul.f32 %v796_v7, %v796_v7  ;;  %v918_v26 = vmul.f32 %v791_v6, %v791_v6  ;;  %v923_v27 = vld [vmem:[%s1396_s0 + $0x58] sm:$0xff] }
   0x6   :  { %125 = vrot.lane.b32.xlu1 %v763_v2, %s729_s13  ;;  %v910_v25 = vmul.f32 %v898_v23, %v898_v23  ;;  %v931_v28 = vmul.f32 %v923_v27, %v923_v27  ;;  %v936_v29 = vld [vmem:[%s1396_s0 + $0x68] sm:$0xff]  ;;  %v944_v30 = vmul.f32 %v809_v9, %v809_v9  ;;  %v957_v32 = vld [vmem:[%s1396_s0 + $0x90] sm:$0xff]  ;;  %v962_v33 = vld [vmem:[%s1396_s0 + $0x78] sm:$0xff] }
   0x7   :  { %121 = vrot.lane.b32.xlu0 %v768_v3, %s729_s13  ;;  %v948_v31 = vmul.f32 %v936_v29, %v936_v29  ;;  %v970_v34 = vmul.f32 %v957_v32, %v957_v32  ;;  %v974_v35 = vmul.f32 %v962_v33, %v962_v33  ;;  %v983_v36 = vld [vmem:[%s1396_s0 + $0xa0] sm:$0xff]  ;;  %v988_v37 = vld [vmem:[%s1396_s0 + $0x88] sm:$0xff]  ;;  %v1009_v40 = vld [vmem:[%s1396_s0 + $0xb0] sm:$0xff] }
   0x8   :  { %v996_v38 = vmul.f32 %v983_v36, %v983_v36  ;;  %v1000_v39 = vmul.f32 %v988_v37, %v988_v37  ;;  %v1014_v41 = vld [vmem:[%s1396_s0 + $0x98] sm:$0xff]  ;;  %v1022_v42 = vmul.f32 %v1009_v40, %v1009_v40  ;;  %v1035_v44 = vld [vmem:[%s1396_s0 + $0xc0] sm:$0xff]  ;;  %v1040_v45 = vld [vmem:[%s1396_s0 + $0xa8] sm:$0xff] }
   0x9   :  { %1422 = vst [vmem:[#allocation2_spill] sm:$0xff] %v970_v34  ;;  %1423 = vst [vmem:[#allocation3_spill] sm:$0xff] %v974_v35  ;;  %v1026_v43 = vmul.f32 %v1014_v41, %v1014_v41  ;;  %v1048_v46 = vmul.f32 %v1035_v44, %v1035_v44  ;;  %v1052_v47 = vmul.f32 %v1040_v45, %v1040_v45  ;;  %v1061_v48 = vld [vmem:[%s1396_s0 + $0xd0] sm:$0xff]  ;;  %v1066_v49 = vld [vmem:[%s1396_s0 + $0xb8] sm:$0xff] }
   0xa   :  { %129 = vrot.lane.b32.xlu1 %v777_v4, %s729_s13  ;;  %1424 = vst [vmem:[#allocation4_spill] sm:$0xff] %v996_v38  ;;  %1425 = vst [vmem:[#allocation5_spill] sm:$0xff] %v1000_v39  ;;  %v1074_v50 = vmul.f32 %v1061_v48, %v1061_v48  ;;  %v1078_v51 = vmul.f32 %v1066_v49, %v1066_v49  ;;  %v1087_v52 = vld [vmem:[%s1396_s0 + $0xe0] sm:$0xff]  ;;  %v1092_v53 = vld [vmem:[%s1396_s0 + $0xc8] sm:$0xff] }
   0xb   :  { %127 = vrot.lane.b32.xlu0 %v782_v5, %s729_s13  ;;  %1426 = vst [vmem:[#allocation6_spill] sm:$0xff] %v1022_v42  ;;  %1427 = vst [vmem:[#allocation7_spill] sm:$0xff] %v1026_v43  ;;  %v1100_v54 = vmul.f32 %v1087_v52, %v1087_v52  ;;  %v1104_v55 = vmul.f32 %v1092_v53, %v1092_v53  ;;  %v1113_v56 = vld [vmem:[%s1396_s0 + $0xf0] sm:$0xff]  ;;  %v1118_v57 = vld [vmem:[%s1396_s0 + $0xd8] sm:$0xff] }
   0xc   :  { %1428 = vst [vmem:[#allocation8_spill] sm:$0xff] %v1048_v46  ;;  %1429 = vst [vmem:[#allocation9_spill] sm:$0xff] %v1052_v47  ;;  %v1129_v59 = vmul.f32 %v1113_v56, %v1113_v56  ;;  %v1133_v60 = vmul.f32 %v1118_v57, %v1118_v57  ;;  %v1138_v61 = vld [vmem:[%s1396_s0 + $0xe8] sm:$0xff] }
   0xd   :  { %1430 = vst [vmem:[#allocation10_spill] sm:$0xff] %v1061_v48  ;;  %1431 = vst [vmem:[#allocation11_spill] sm:$0xff] %v1074_v50  ;;  %v1146_v58 = vmul.f32 %v1138_v61, %v1138_v61 }
   0xe   :  { %133 = vrot.lane.b32.xlu1 %v791_v6, %s729_s13  ;;  %1432 = vst [vmem:[#allocation12_spill] sm:$0xff] %v1078_v51  ;;  %1433 = vst [vmem:[#allocation13_spill] sm:$0xff] %v1087_v52 }
   0xf   :  { %131 = vrot.lane.b32.xlu0 %v796_v7, %s729_s13  ;;  %1434 = vst [vmem:[#allocation14_spill] sm:$0xff] %v1092_v53  ;;  %1435 = vst [vmem:[#allocation15_spill] sm:$0xff] %v1100_v54 }
  0x10   :  { %1436 = vst [vmem:[#allocation16_spill] sm:$0xff] %v1104_v55  ;;  %1437 = vst [vmem:[#allocation17_spill] sm:$0xff] %v1113_v56 }
  0x11   :  { %1438 = vst [vmem:[#allocation18_spill] sm:$0xff] %v1118_v57  ;;  %1439 = vst [vmem:[#allocation19_spill] sm:$0xff] %v1129_v59 }
  0x12   :  { %311 = vrot.lane.b32.xlu1 %v804_v8, %s729_s13  ;;  %1440 = vst [vmem:[#allocation20_spill] sm:$0xff] %v1133_v60  ;;  %1441 = vst [vmem:[#allocation21_spill] sm:$0xff] %v1138_v61 }
  0x13   :  { %135 = vrot.lane.b32.xlu0 %v809_v9, %s729_s13  ;;  %1442 = vst [vmem:[#allocation22_spill] sm:$0xff] %v1146_v58 }
  0x16   :  { %315 = vrot.lane.b32.xlu1 %v821_v11, %s729_s13 }
  0x17   :  { %313 = vrot.lane.b32.xlu0 %v817_v10, %s729_s13 }
  0x1a   :  { %217 = vrot.lane.b32.xlu1 %v835_v13, %s729_s13 }
  0x1b   :  { %215 = vrot.lane.b32.xlu0 %v830_v12, %s729_s13 }
  0x1e   :  { %423 = vrot.lane.b32.xlu1 %v847_v15, %s729_s13 }
  0x1f   :  { %317 = vrot.lane.b32.xlu0 %v843_v14, %s729_s13 }
  0x22   :  { %219 = vrot.lane.b32.xlu1 %v860_v17, %s729_s13 }
  0x23   :  { %425 = vrot.lane.b32.xlu0 %v855_v16, %s729_s13 }
  0x26   :  { %427 = vrot.lane.b32.xlu1 %v872_v19, %s729_s13 }
  0x27   :  { %319 = vrot.lane.b32.xlu0 %v868_v18, %s729_s13 }
  0x2a   :  { %321 = vrot.lane.b32.xlu1 %v880_v20, %s729_s13 }
  0x2b   :  { %221 = vrot.lane.b32.xlu0 %v885_v21, %s729_s13 }
  0x2e   :  { %223 = vrot.lane.b32.xlu1 %v898_v23, %s729_s13 }
  0x2f   :  { %429 = vrot.lane.b32.xlu0 %v893_v22, %s729_s13 }
  0x32   :  { %431 = vrot.lane.b32.xlu1 %v910_v25, %s729_s13 }
  0x33   :  { %323 = vrot.lane.b32.xlu0 %v906_v24, %s729_s13 }
  0x36   :  { %325 = vrot.lane.b32.xlu1 %v918_v26, %s729_s13 }
  0x37   :  { %225 = vrot.lane.b32.xlu0 %v923_v27, %s729_s13 }
  0x3a   :  { %227 = vrot.lane.b32.xlu1 %v936_v29, %s729_s13 }
  0x3b   :  { %433 = vrot.lane.b32.xlu0 %v931_v28, %s729_s13 }
  0x3e   :  { %435 = vrot.lane.b32.xlu1 %v948_v31, %s729_s13 }
  0x3f   :  { %327 = vrot.lane.b32.xlu0 %v944_v30, %s729_s13 }
  0x42   :  { %229 = vrot.lane.b32.xlu1 %v962_v33, %s729_s13 }
  0x43   :  { %137 = vrot.lane.b32.xlu0 %v957_v32, %s729_s13 }
  0x46   :  { %437 = vrot.lane.b32.xlu1 %v974_v35, %s729_s13 }
  0x47   :  { %329 = vrot.lane.b32.xlu0 %v970_v34, %s729_s13 }
  0x4a   :  { %231 = vrot.lane.b32.xlu1 %v988_v37, %s729_s13 }
  0x4b   :  { %139 = vrot.lane.b32.xlu0 %v983_v36, %s729_s13 }
  0x4e   :  { %439 = vrot.lane.b32.xlu1 %v1000_v39, %s729_s13 }
  0x4f   :  { %331 = vrot.lane.b32.xlu0 %v996_v38, %s729_s13 }
  0x52   :  { %233 = vrot.lane.b32.xlu1 %v1014_v41, %s729_s13 }
  0x53   :  { %141 = vrot.lane.b32.xlu0 %v1009_v40, %s729_s13 }
  0x56   :  { %441 = vrot.lane.b32.xlu1 %v1026_v43, %s729_s13 }
  0x57   :  { %333 = vrot.lane.b32.xlu0 %v1022_v42, %s729_s13 }
  0x5a   :  { %235 = vrot.lane.b32.xlu1 %v1040_v45, %s729_s13 }
  0x5b   :  { %143 = vrot.lane.b32.xlu0 %v1035_v44, %s729_s13 }
  0x5e   :  { %443 = vrot.lane.b32.xlu1 %v1052_v47, %s729_s13 }
  0x5f   :  { %335 = vrot.lane.b32.xlu0 %v1048_v46, %s729_s13 }
  0x62   :  { %237 = vrot.lane.b32.xlu1 %v1066_v49, %s729_s13 }
  0x63   :  { %145 = vrot.lane.b32.xlu0 %v1061_v48, %s729_s13 }
  0x66   :  { %445 = vrot.lane.b32.xlu1 %v1078_v51, %s729_s13 }
  0x67   :  { %337 = vrot.lane.b32.xlu0 %v1074_v50, %s729_s13 }
  0x6a   :  { %239 = vrot.lane.b32.xlu1 %v1092_v53, %s729_s13 }
  0x6b   :  { %147 = vrot.lane.b32.xlu0 %v1087_v52, %s729_s13 }
  0x6e   :  { %447 = vrot.lane.b32.xlu1 %v1104_v55, %s729_s13 }
  0x6f   :  { %339 = vrot.lane.b32.xlu0 %v1100_v54, %s729_s13 }
  0x72   :  { %241 = vrot.lane.b32.xlu1 %v1118_v57, %s729_s13 }
  0x73   :  { %149 = vrot.lane.b32.xlu0 %v1113_v56, %s729_s13  ;;  %v1151_v56 = vld [vmem:[%s1396_s0 + $0xf8] sm:$0xff] }
  0x74   :  { %v124_v62 = vpop.permute.xlu1 %123  ;;  %1443 = vst [vmem:[#allocation23_spill] sm:$0xff] %v1151_v56 }
  0x75   :  { %v120_v63 = vpop.permute.xlu0 %119  ;;  %v169_v35 = vadd.f32 %v124_v62, %v749_v0 }
  0x76   :  { %449 = vrot.lane.b32.xlu1 %v1133_v60, %s729_s13  ;;  %v167_v50 = vadd.f32 %v120_v63, %v754_v1 }
  0x77   :  { %341 = vrot.lane.b32.xlu0 %v1129_v59, %s729_s13  ;;  %v1159_v59 = vmul.f32 %v1151_v56, %v1151_v56 }
  0x78   :  { %v126_v54 = vpop.permute.xlu1 %125 }
  0x79   :  { %v122_v52 = vpop.permute.xlu0 %121  ;;  %1444 = vst [vmem:[#allocation24_spill] sm:$0xff] %v1159_v59 }
  0x7a   :  { %451 = vrot.lane.b32.xlu1 %v1146_v58, %s729_s13  ;;  %v168_v47 = vadd.f32 %v122_v52, %v768_v3 }
  0x7b   :  { %243 = vrot.lane.b32.xlu0 %v1138_v61, %s729_s13 }
  0x7c   :  { %v1161_v60 = vpop.permute.xlu1 %129  ;;  %v184_v42 = vadd.f32 %v168_v47, %v835_v13 }
  0x7d   :  { %v128_v55 = vpop.permute.xlu0 %127 }
  0x7e   :  { %453 = vrot.lane.b32.xlu1 %v1159_v59, %s729_s13 }
  0x7f   :  { %245 = vrot.lane.b32.xlu0 %v1151_v56, %s729_s13  ;;  %v183_v56 = vadd.f32 %v167_v50, %v830_v12 }
  0x80   :  { %v1167_v57 = vpop.permute.xlu1 %133 }
  0x81   :  { %v1169_v51 = vpop.permute.xlu0 %131 }
  0x84   :  { %v312_v58 = vpop.permute.xlu1 %311 }
  0x85   :  { %v1171_v61 = vpop.permute.xlu0 %135  ;;  %v359_v43 = vadd.f32 %v312_v58, %v804_v8 }
  0x87   :  { %v391_v8 = vadd.f32 %v847_v15, %v359_v43 }
  0x88   :  { %v316_v48 = vpop.permute.xlu1 %315 }
  0x89   :  { %v314_v46 = vpop.permute.xlu0 %313 }
  0x8a   :  { %v360_v34 = vadd.f32 %v314_v46, %v817_v10  ;;  %v185_v46 = vadd.f32 %v169_v35, %v860_v17 }
  0x8c   :  { %v218_v38 = vpop.permute.xlu1 %217 }
  0x8d   :  { %v216_v59 = vpop.permute.xlu0 %215  ;;  %v264_v53 = vadd.f32 %v218_v38, %v184_v42  ;;  %v361_v38 = vadd.f32 %v316_v48, %v821_v11  ;;  %v392_v42 = vadd.f32 %v855_v16, %v360_v34  ;;  %v171_v48 = vadd.f32 %v128_v55, %v782_v5 }
  0x8e   :  { %v263_v39 = vadd.f32 %v216_v59, %v183_v56  ;;  %v170_v56 = vadd.f32 %v126_v54, %v763_v2 }
  0x8f   :  { %v571_v3 = vsel %vm569_vm1, %v264_v53, 0.0  ;;  %670 = vst.msk [vmem:[%s1398_s1 + $0x8] sm:$0xff] %vm569_vm1, %v264_v53  ;;  %v393_v11 = vadd.f32 %v872_v19, %v361_v38  ;;  %v187_v5 = vadd.f32 %v171_v48, %v898_v23 }
  0x90   :  { %v570_v1 = vsel %vm569_vm1, %v263_v39, 0.0  ;;  %669 = vst.msk [vmem:[%s1398_s1] sm:$0xff] %vm569_vm1, %v263_v39  ;;  %v424_v13 = vpop.permute.xlu1 %423  ;;  %v186_v62 = vadd.f32 %v170_v56, %v885_v21  ;;  %v172_v21 = vadd.f32 %v1161_v60, %v777_v4 }
  0x91   :  { %v572_v12 = vadd.f32 %v571_v3, %v570_v1  ;;  %v318_v0 = vpop.permute.xlu0 %317  ;;  %v471_v10 = vadd.f32 %v424_v13, %v391_v8 }
  0x92   :  { %v362_v54 = vadd.f32 %v318_v0, %v843_v14  ;;  %v188_v38 = vadd.f32 %v172_v21, %v923_v27 }
  0x93   :  { %v624_v53 = vsel %vm569_vm1, %v471_v10, 0.0  ;;  %v173_v10 = vadd.f32 %v1169_v51, %v796_v7  ;;  %v174_v7 = vadd.f32 %v1167_v57, %v791_v6 }
  0x94   :  { %v220_v47 = vpop.permute.xlu1 %219  ;;  %v394_v19 = vadd.f32 %v893_v22, %v362_v54 }
  0x95   :  { %v426_v39 = vpop.permute.xlu0 %425  ;;  %v265_v52 = vadd.f32 %v220_v47, %v185_v46  ;;  %v189_v60 = vadd.f32 %v173_v10, %v936_v29 }
  0x96   :  { %v472_v50 = vadd.f32 %v426_v39, %v392_v42 }
  0x97   :  { %v573_v43 = vsel %vm569_vm1, %v265_v52, 0.0  ;;  %671 = vst.msk [vmem:[%s1398_s1 + $0x10] sm:$0xff] %vm569_vm1, %v265_v52  ;;  %v190_v52 = vadd.f32 %v174_v7, %v962_v33 }
  0x98   :  { %v625_v15 = vsel %vm569_vm1, %v472_v50, 0.0  ;;  %v1203_v17 = vadd.f32 %v573_v43, %v572_v12  ;;  %v428_v35 = vpop.permute.xlu1 %427 }
  0x99   :  { %v626_v16 = vadd.f32 %v625_v15, %v624_v53  ;;  %v1205_v34 = vpop.permute.xlu0 %319  ;;  %v473_v2 = vadd.f32 %v428_v35, %v393_v11  ;;  %v175_v15 = vadd.f32 %v1171_v61, %v809_v9 }
  0x9b   :  { %v627_v59 = vsel %vm569_vm1, %v473_v2, 0.0  ;;  %v191_v43 = vadd.f32 %v175_v15, %v988_v37 }
  0x9c   :  { %v628_v63 = vadd.f32 %v627_v59, %v626_v16  ;;  %v322_v1 = vpop.permute.xlu1 %321 }
  0x9d   :  { %v222_v58 = vpop.permute.xlu0 %221 }
  0x9e   :  { %v1211_v3 = vadd.f32 %v222_v58, %v186_v62 }
  0xa0   :  { %672 = vst.msk [vmem:[%s1398_s1 + $0x18] sm:$0xff] %vm569_vm1, %v1211_v3  ;;  %v224_v55 = vpop.permute.xlu1 %223 }
  0xa1   :  { %v430_v14 = vpop.permute.xlu0 %429  ;;  %v1220_v12 = vadd.f32 %v224_v55, %v187_v5 }
  0xa2   :  { %v474_v8 = vadd.f32 %v430_v14, %v394_v19 }
  0xa3   :  { %673 = vst.msk [vmem:[%s1398_s1 + $0x20] sm:$0xff] %vm569_vm1, %v1220_v12 }
  0xa4   :  { %v629_v0 = vsel %vm569_vm1, %v474_v8, 0.0  ;;  %v432_v23 = vpop.permute.xlu1 %431  ;;  %v364_v8 = vadd.f32 %v322_v1, %v880_v20 }
  0xa5   :  { %v1230_v13 = vadd.f32 %v629_v0, %v628_v63  ;;  %v324_v22 = vpop.permute.xlu0 %323 }
  0xa8   :  { %v326_v46 = vpop.permute.xlu1 %325 }
  0xa9   :  { %v226_v42 = vpop.permute.xlu0 %225 }
  0xaa   :  { %v1235_v4 = vadd.f32 %v226_v42, %v188_v38 }
  0xac   :  { %674 = vst.msk [vmem:[%s1398_s1 + $0x28] sm:$0xff] %vm569_vm1, %v1235_v4  ;;  %v228_v47 = vpop.permute.xlu1 %227 }
  0xad   :  { %v434_v39 = vpop.permute.xlu0 %433  ;;  %v1243_v50 = vadd.f32 %v228_v47, %v189_v60  ;;  %v366_v60 = vadd.f32 %v326_v46, %v918_v26  ;;  %v396_v47 = vadd.f32 %v931_v28, %v364_v8  ;;  %v577_v28 = vsel %vm569_vm1, %v1220_v12, 0.0  ;;  %v1446_v46 = vld [vmem:[#allocation3_spill] sm:$0xff]  ;;  %v1454_v8 = vld [vmem:[#allocation9_spill] sm:$0xff] }
  0xaf   :  { %675 = vst.msk [vmem:[%s1398_s1 + $0x30] sm:$0xff] %vm569_vm1, %v1243_v50  ;;  %v398_v7 = vadd.f32 %v1446_v46, %v366_v60  ;;  %v1455_v60 = vld [vmem:[#allocation11_spill] sm:$0xff] }
  0xb0   :  { %v436_v51 = vpop.permute.xlu1 %435 }
  0xb1   :  { %v328_v27 = vpop.permute.xlu0 %327 }
  0xb2   :  { %v367_v20 = vadd.f32 %v328_v27, %v944_v30 }
  0xb4   :  { %v230_v53 = vpop.permute.xlu1 %229 }
  0xb5   :  { %v138_v56 = vpop.permute.xlu0 %137  ;;  %v1253_v29 = vadd.f32 %v230_v53, %v190_v52  ;;  %v1447_v52 = vld [vmem:[#allocation14_spill] sm:$0xff] }
  0xb6   :  { %v176_v35 = vadd.f32 %v138_v56, %v957_v32 }
  0xb7   :  { %676 = vst.msk [vmem:[%s1398_s1 + $0x38] sm:$0xff] %vm569_vm1, %v1253_v29 }
  0xb8   :  { %v438_v57 = vpop.permute.xlu1 %437  ;;  %v192_v2 = vadd.f32 %v176_v35, %v1014_v41  ;;  %v581_v35 = vsel %vm569_vm1, %v1243_v50, 0.0 }
  0xb9   :  { %v330_v6 = vpop.permute.xlu0 %329  ;;  %v478_v15 = vadd.f32 %v438_v57, %v398_v7  ;;  %v1459_v7 = vld [vmem:[#allocation13_spill] sm:$0xff] }
  0xbc   :  { %v232_v16 = vpop.permute.xlu1 %231 }
  0xbd   :  { %v140_v11 = vpop.permute.xlu0 %139  ;;  %v1263_v33 = vadd.f32 %v232_v16, %v191_v43  ;;  %v1449_v43 = vld [vmem:[#allocation4_spill] sm:$0xff] }
  0xbe   :  { %v177_v37 = vadd.f32 %v140_v11, %v983_v36  ;;  %v363_v36 = vadd.f32 %v1205_v34, %v868_v18  ;;  %v476_v34 = vadd.f32 %v434_v39, %v396_v47  ;;  %v1448_v39 = vld [vmem:[#allocation5_spill] sm:$0xff] }
  0xbf   :  { %677 = vst.msk [vmem:[%s1398_s1 + $0x40] sm:$0xff] %vm569_vm1, %v1263_v33  ;;  %v399_v56 = vadd.f32 %v1448_v39, %v367_v20  ;;  %v1457_v20 = vld [vmem:[#allocation18_spill] sm:$0xff] }
  0xc0   :  { %v440_v61 = vpop.permute.xlu1 %439  ;;  %v193_v63 = vadd.f32 %v177_v37, %v1040_v45  ;;  %v395_v21 = vadd.f32 %v910_v25, %v363_v36  ;;  %v633_v12 = vsel %vm569_vm1, %v476_v34, 0.0 }
  0xc1   :  { %v332_v9 = vpop.permute.xlu0 %331 }
  0xc2   :  { %v475_v42 = vadd.f32 %v432_v23, %v395_v21 }
  0xc4   :  { %v234_v54 = vpop.permute.xlu1 %233 }
  0xc5   :  { %v142_v48 = vpop.permute.xlu0 %141  ;;  %v1272_v59 = vadd.f32 %v234_v54, %v192_v2  ;;  %v1451_v54 = vld [vmem:[#allocation7_spill] sm:$0xff] }
  0xc6   :  { %v178_v41 = vadd.f32 %v142_v48, %v1009_v40  ;;  %v365_v40 = vadd.f32 %v324_v22, %v906_v24  ;;  %v575_v24 = vsel %vm569_vm1, %v1211_v3, 0.0  ;;  %v1445_v22 = vld [vmem:[#allocation2_spill] sm:$0xff]  ;;  %v579_v3 = vsel %vm569_vm1, %v1235_v4, 0.0 }
  0xc7   :  { %678 = vst.msk [vmem:[%s1398_s1 + $0x48] sm:$0xff] %vm569_vm1, %v1272_v59  ;;  %v368_v23 = vadd.f32 %v330_v6, %v1445_v22  ;;  %v576_v27 = vadd.f32 %v575_v24, %v1203_v17  ;;  %v479_v17 = vadd.f32 %v440_v61, %v399_v56  ;;  %v1450_v4 = vld [vmem:[#allocation6_spill] sm:$0xff] }
  0xc8   :  { %v442_v62 = vpop.permute.xlu1 %441  ;;  %v194_v45 = vadd.f32 %v178_v41, %v1066_v49  ;;  %v397_v26 = vadd.f32 %v948_v31, %v365_v40 }
  0xc9   :  { %v334_v32 = vpop.permute.xlu0 %333  ;;  %v578_v6 = vadd.f32 %v577_v28, %v576_v27  ;;  %v400_v37 = vadd.f32 %v1451_v54, %v368_v23  ;;  %v639_v40 = vsel %vm569_vm1, %v479_v17, 0.0  ;;  %v1460_v27 = vld [vmem:[#allocation15_spill] sm:$0xff] }
  0xca   :  { %v477_v1 = vadd.f32 %v436_v51, %v397_v26  ;;  %v369_v51 = vadd.f32 %v332_v9, %v1449_v43  ;;  %v370_v48 = vadd.f32 %v334_v32, %v1450_v4  ;;  %v1453_v32 = vld [vmem:[#allocation8_spill] sm:$0xff]  ;;  %v1463_v4 = vld [vmem:[#allocation17_spill] sm:$0xff]  ;;  %v1464_v54 = vld [vmem:[#allocation19_spill] sm:$0xff] }
  0xcb   :  { %v580_v57 = vadd.f32 %v579_v3, %v578_v6  ;;  %v480_v41 = vadd.f32 %v442_v62, %v400_v37 }
  0xcc   :  { %v236_v19 = vpop.permute.xlu1 %235  ;;  %v635_v2 = vsel %vm569_vm1, %v477_v1, 0.0 }
  0xcd   :  { %v144_v58 = vpop.permute.xlu0 %143  ;;  %v1281_v5 = vadd.f32 %v236_v19, %v193_v63  ;;  %v1452_v63 = vld [vmem:[#allocation10_spill] sm:$0xff]  ;;  %v637_v19 = vsel %vm569_vm1, %v478_v15, 0.0  ;;  %v582_v21 = vadd.f32 %v581_v35, %v580_v57  ;;  %v1462_v35 = vld [vmem:[#allocation21_spill] sm:$0xff] }
  0xce   :  { %v179_v18 = vadd.f32 %v144_v58, %v1035_v44  ;;  %v631_v44 = vsel %vm569_vm1, %v475_v42, 0.0 }
  0xcf   :  { %679 = vst.msk [vmem:[%s1398_s1 + $0x50] sm:$0xff] %vm569_vm1, %v1281_v5  ;;  %v632_v16 = vadd.f32 %v631_v44, %v1230_v13  ;;  %v583_v13 = vsel %vm569_vm1, %v1253_v29, 0.0  ;;  %v1456_v29 = vld [vmem:[#allocation12_spill] sm:$0xff]  ;;  %v641_v44 = vsel %vm569_vm1, %v480_v41, 0.0 }
  0xd0   :  { %v444_v55 = vpop.permute.xlu1 %443  ;;  %v195_v30 = vadd.f32 %v179_v18, %v1447_v52  ;;  %v402_v18 = vadd.f32 %v1456_v29, %v370_v48  ;;  %v584_v34 = vadd.f32 %v583_v13, %v582_v21 }
  0xd1   :  { %v336_v14 = vpop.permute.xlu0 %335  ;;  %v634_v9 = vadd.f32 %v633_v12, %v632_v16 }
  0xd2   :  { %v371_v36 = vadd.f32 %v336_v14, %v1453_v32  ;;  %v587_v14 = vsel %vm569_vm1, %v1272_v59, 0.0 }
  0xd4   :  { %v238_v10 = vpop.permute.xlu1 %237 }
  0xd5   :  { %v146_v0 = vpop.permute.xlu0 %145  ;;  %v1295_v38 = vadd.f32 %v238_v10, %v194_v45  ;;  %v401_v45 = vadd.f32 %v1454_v8, %v369_v51  ;;  %v585_v10 = vsel %vm569_vm1, %v1263_v33, 0.0  ;;  %v1458_v33 = vld [vmem:[#allocation16_spill] sm:$0xff] }
  0xd6   :  { %v180_v58 = vadd.f32 %v146_v0, %v1452_v63  ;;  %v636_v0 = vadd.f32 %v635_v2, %v634_v9  ;;  %v403_v22 = vadd.f32 %v1458_v33, %v371_v36  ;;  %v1465_v63 = vld [vmem:[#allocation22_spill] sm:$0xff] }
  0xd7   :  { %680 = vst.msk [vmem:[%s1398_s1 + $0x58] sm:$0xff] %vm569_vm1, %v1295_v38  ;;  %v481_v42 = vadd.f32 %v444_v55, %v401_v45  ;;  %v586_v55 = vadd.f32 %v585_v10, %v584_v34  ;;  %v1466_v45 = vld [vmem:[#allocation23_spill] sm:$0xff] }
  0xd8   :  { %v446_v49 = vpop.permute.xlu1 %445  ;;  %v196_v24 = vadd.f32 %v180_v58, %v1457_v20  ;;  %v638_v62 = vadd.f32 %v637_v19, %v636_v0  ;;  %v1467_v0 = vld [vmem:[#allocation24_spill] sm:$0xff] }
  0xd9   :  { %v338_v25 = vpop.permute.xlu0 %337  ;;  %v482_v1 = vadd.f32 %v446_v49, %v402_v18  ;;  %v1461_v49 = vld [vmem:[#allocation20_spill] sm:$0xff]  ;;  %v588_v56 = vadd.f32 %v587_v14, %v586_v55 }
  0xda   :  { %v372_v47 = vadd.f32 %v338_v25, %v1455_v60  ;;  %v640_v46 = vadd.f32 %v639_v40, %v638_v62  ;;  %v589_v25 = vsel %vm569_vm1, %v1281_v5, 0.0  ;;  %v591_v5 = vsel %vm569_vm1, %v1295_v38, 0.0 }
  0xdb   :  { %v590_v51 = vadd.f32 %v589_v25, %v588_v56 }
  0xdc   :  { %v240_v53 = vpop.permute.xlu1 %239  ;;  %v404_v39 = vadd.f32 %v1461_v49, %v372_v47 }
  0xdd   :  { %v148_v31 = vpop.permute.xlu0 %147  ;;  %v275_v11 = vadd.f32 %v240_v53, %v195_v30  ;;  %v643_v30 = vsel %vm569_vm1, %v481_v42, 0.0  ;;  %v642_v53 = vadd.f32 %v641_v44, %v640_v46  ;;  %v592_v57 = vadd.f32 %v591_v5, %v590_v51 }
  0xde   :  { %v181_v52 = vadd.f32 %v148_v31, %v1459_v7  ;;  %v645_v31 = vsel %vm569_vm1, %v482_v1, 0.0 }
  0xdf   :  { %681 = vst.msk [vmem:[%s1398_s1 + $0x60] sm:$0xff] %vm569_vm1, %v275_v11  ;;  %v644_v6 = vadd.f32 %v643_v30, %v642_v53  ;;  %v593_v16 = vsel %vm569_vm1, %v275_v11, 0.0 }
  0xe0   :  { %v448_v61 = vpop.permute.xlu1 %447  ;;  %v197_v17 = vadd.f32 %v181_v52, %v1462_v35  ;;  %v594_v41 = vadd.f32 %v593_v16, %v592_v57 }
  0xe1   :  { %v340_v50 = vpop.permute.xlu0 %339  ;;  %v483_v59 = vadd.f32 %v448_v61, %v403_v22  ;;  %v646_v9 = vadd.f32 %v645_v31, %v644_v6 }
  0xe2   :  { %v373_v3 = vadd.f32 %v340_v50, %v1460_v27  ;;  %v662_v27 = vld [vmem:[%s1397_s2] sm:$0x1] }
  0xe3   :  { %v647_v2 = vsel %vm569_vm1, %v483_v59, 0.0 }
  0xe4   :  { %v242_v28 = vpop.permute.xlu1 %241  ;;  %v405_v58 = vadd.f32 %v1465_v63, %v373_v3  ;;  %v648_v32 = vadd.f32 %v647_v2, %v646_v9  ;;  %v666_v3 = vld [vmem:[%s1397_s2 + $0x1] sm:$0x1] }
  0xe5   :  { %v150_v26 = vpop.permute.xlu0 %149  ;;  %v276_v23 = vadd.f32 %v242_v28, %v196_v24 }
  0xe6   :  { %v182_v48 = vadd.f32 %v150_v26, %v1463_v4 }
  0xe7   :  { %682 = vst.msk [vmem:[%s1398_s1 + $0x68] sm:$0xff] %vm569_vm1, %v276_v23  ;;  %v595_v50 = vsel %vm569_vm1, %v276_v23, 0.0 }
  0xe8   :  { %v450_v15 = vpop.permute.xlu1 %449  ;;  %v198_v21 = vadd.f32 %v182_v48, %v1466_v45  ;;  %v596_v40 = vadd.f32 %v595_v50, %v594_v41 }
  0xe9   :  { %v342_v12 = vpop.permute.xlu0 %341  ;;  %v484_v43 = vadd.f32 %v450_v15, %v404_v39 }
  0xea   :  { %v374_v37 = vadd.f32 %v342_v12, %v1464_v54 }
  0xeb   :  { %v649_v61 = vsel %vm569_vm1, %v484_v43, 0.0 }
  0xec   :  { %v452_v13 = vpop.permute.xlu1 %451  ;;  %v406_v10 = vadd.f32 %v1467_v0, %v374_v37  ;;  %v650_v42 = vadd.f32 %v649_v61, %v648_v32 }
  0xed   :  { %v244_v38 = vpop.permute.xlu0 %243  ;;  %v485_v11 = vadd.f32 %v452_v13, %v405_v58 }
  0xee   :  { %v277_v19 = vadd.f32 %v244_v38, %v197_v17 }
  0xef   :  { %v651_v8 = vsel %vm569_vm1, %v485_v11, 0.0 }
  0xf0   :  { %v597_v36 = vsel %vm569_vm1, %v277_v19, 0.0  ;;  %683 = vst.msk [vmem:[%s1398_s1 + $0x70] sm:$0xff] %vm569_vm1, %v277_v19  ;;  %v454_v47 = vpop.permute.xlu1 %453  ;;  %v652_v24 = vadd.f32 %v651_v8, %v650_v42 }
  0xf1   :  { %v246_v60 = vpop.permute.xlu0 %245  ;;  %v486_v18 = vadd.f32 %v454_v47, %v406_v10  ;;  %v598_v20 = vadd.f32 %v597_v36, %v596_v40 }
  0xf2   :  { %v278_v29 = vadd.f32 %v246_v60, %v198_v21 }
  0xf3   :  { %v653_v62 = vsel %vm569_vm1, %v486_v18, 0.0 }
  0xf4   :  { %v599_v34 = vsel %vm569_vm1, %v278_v29, 0.0  ;;  %684 = vst.msk [vmem:[%s1398_s1 + $0x78] sm:$0xff] %vm569_vm1, %v278_v29  ;;  %v654_v26 = vadd.f32 %v653_v62, %v652_v24 }
  0xf5   :  { %v600_v14 = vadd.f32 %v599_v34, %v598_v20 }
  0xf6   :  { %v655_v44 = vsel %vm569_vm1, %v654_v26, 0.0 }
  0xf7   :  { %v601_v28 = vsel %vm569_vm1, %v600_v14, 0.0  ;;  %v656_v33 = vrot.slane %v655_v44, 4 }
  0xf8   :  { %v602_v1 = vrot.slane %v601_v28, 4 }
  0xf9   :  { %v657_v23 = vadd.f32 %v656_v33, %v655_v44 }
  0xfa   :  { %v603_v22 = vadd.f32 %v602_v1, %v601_v28 }
  0xfb   :  { %v658_v46 = vrot.slane %v657_v23, 2 }
  0xfc   :  { %v604_v55 = vrot.slane %v603_v22, 2 }
  0xfd   :  { %v659_v7 = vadd.f32 %v658_v46, %v657_v23 }
  0xfe   :  { %v605_v25 = vadd.f32 %v604_v55, %v603_v22 }
  0xff   :  { %v660_v30 = vrot.slane %v659_v7, 1 }
 0x100   :  { %v606_v52 = vrot.slane %v605_v25, 1 }
 0x101   :  { %v661_v49 = vadd.f32 %v660_v30, %v659_v7 }
 0x102   :  { %v607_v59 = vadd.f32 %v606_v52, %v605_v25 }
 0x103   :  { %v667_v56 = vadd.f32 %v666_v3, %v661_v49 }
 0x104   :  { %v663_v39 = vadd.f32 %v662_v27, %v607_v59 }
 0x105   :  { %668 = vst.msk [vmem:[%s1397_s2 + $0x1] sm:$0x1] %vm664_vm2, %v667_v56 }
 0x106   :  { %665 = vst.msk [vmem:[%s1397_s2] sm:$0x1] %vm664_vm2, %v663_v39 }

</bundles_post_ra>
